<compile_context>
chip_gen: v7x
topology: tpu7x:2x2x1
jax: 0.10.0
libtpu: 0.0.40
codegen_flags: <defaults>
</compile_context>

<pallas_src>
import jax
import jax.numpy as jnp
from jax.experimental import pallas as pl
from jax.experimental.pallas import tpu as pltpu


def _round_up(v, m):
    return (v + m - 1) // m * m


def _make_kernel(Cin, Cout, Wp, C1W, C2W):
    # Flat-index offsets of the 3x3 taps on the padded (stride = Wp) grid.
    taps = tuple(dh * Wp + dw for dh in range(3) for dw in range(3))
    ident_off = 2 * Wp + 2   # flat offset of the un-padded interior (identity)

    def kernel(x_ref, w1_ref, w2_ref, b1_ref, b2_ref, mask_ref, out_ref,
               p1_ref, p2_ref):
        # x_ref  : (1, Cin, XEXT)  zero-margined, flattened, zero-padded input
        # w*_ref : (Cout, 9*C)     im2col conv weights, BN scale pre-folded
        # b*_ref : (Cout, 1)       folded BN shift (per output channel)
        # mask   : (1, C1W)        1.0 on interior positions of the padded grid
        # out_ref: (1, Cout, C2W)  output on the flat padded-stride grid
        # p*_ref : VMEM im2col staging buffers
        xv = x_ref[0]                                      # (Cin, XEXT)

        # ---- conv1 (+ folded bn1) as a single K = 9*Cin im2col matmul ----
        for t, off in enumerate(taps):
            p1_ref[t * Cin:(t + 1) * Cin, :] = xv[:, off:off + C1W]
        # (cast p1/w1 to bf16 here for extra MXU throughput on v6e/v7x)
        y1 = jnp.dot(w1_ref[...], p1_ref[...],
                     preferred_element_type=jnp.float32)   # (Cout, C1W)
        # bn1 shift + ReLU, then zero the halo/tail so y1 *is* conv2's
        # zero-padded input in the same flat layout (no re-padded scratch).
        y1 = jnp.maximum(y1 + b1_ref[...], 0.0) * mask_ref[...]

        # ---- conv2 (+ folded bn2), same im2col trick ----
        for t, off in enumerate(taps):
            p2_ref[t * Cout:(t + 1) * Cout, :] = y1[:, off:off + C2W]
        z = jnp.dot(w2_ref[...], p2_ref[...],
                    preferred_element_type=jnp.float32)    # (Cout, C2W)

        # bn2 shift + residual identity (interior of the padded input) + ReLU
        z = z + b2_ref[...] + xv[:, ident_off:ident_off + C2W]
        out_ref[0] = jnp.maximum(z, 0.0).astype(out_ref.dtype)

    return kernel


def basic_block_forward(x_nchw, w1_oihw, w2_oihw,
                        gamma1, beta1, mean1, var1,
                        gamma2, beta2, mean2, var2, eps=1e-5):
    N, Cin, H, W = x_nchw.shape
    Cout = w1_oihw.shape[0]
    # Identity residual (stride=1, downsample=None) requires Cin == Cout.
    assert Cin == Cout, "identity residual requires inplanes == planes"

    Hp, Wp = H + 2, W + 2
    Np = Hp * Wp                              # flattened padded spatial size
    margin = Wp + 1                           # left zero margin -> all tap offsets >= 0
    C2W = _round_up(Np, 128)                  # conv2 / output compute width (lanes)
    C1W = _round_up(C2W + 2 * Wp + 2, 128)    # conv1 compute width
    XEXT = _round_up(C1W + 2 * Wp + 2, 128)   # extended input width

    f32 = jnp.float32

    # ---- input: NCHW -> zero-pad spatial -> flatten -> lane margin/tail ----
    x = x_nchw.astype(f32)
    x_pad = jnp.pad(x, ((0, 0), (0, 0), (1, 1), (1, 1))).reshape(N, Cin, Np)
    x_ext = jnp.pad(x_pad, ((0, 0), (0, 0), (margin, XEXT - margin - Np)))

    # ---- fold BN (inference stats): scale -> conv weights, shift -> bias ----
    inv1 = gamma1 / jnp.sqrt(var1 + eps)
    inv2 = gamma2 / jnp.sqrt(var2 + eps)
    # OIHW -> (O, kh, kw, I) -> (O, 9*I); K ordering matches the im2col rows
    # (tap-major, channel-minor).
    w1m = (w1_oihw.astype(f32) * inv1[:, None, None, None]
           ).transpose(0, 2, 3, 1).reshape(Cout, 9 * Cin)
    w2m = (w2_oihw.astype(f32) * inv2[:, None, None, None]
           ).transpose(0, 2, 3, 1).reshape(Cout, 9 * Cout)
    b1 = (beta1 - mean1 * inv1).astype(f32).reshape(Cout, 1)
    b2 = (beta2 - mean2 * inv2).astype(f32).reshape(Cout, 1)

    # Interior mask on the flat padded grid (1.0 where conv1's output is real,
    # 0.0 on the halo ring and the alignment tail).
    ii = jnp.arange(C1W)
    hp, wp = ii // Wp, ii % Wp
    mask = ((ii < Np) & (hp >= 1) & (hp <= H) & (wp >= 1) & (wp <= W)
            ).astype(f32).reshape(1, C1W)

    kernel = _make_kernel(Cin, Cout, Wp, C1W, C2W)

    flops = int(2 * 2 * 9 * Cin * Cout * H * W * N)          # two 3x3 convs
    bytes_accessed = int(4 * (x_ext.size + N * Cout * C2W + w1m.size + w2m.size
                              + b1.size + b2.size + mask.size))

    out_flat = pl.pallas_call(
        kernel,
        out_shape=jax.ShapeDtypeStruct((N, Cout, C2W), f32),
        grid_spec=pltpu.PrefetchScalarGridSpec(
            num_scalar_prefetch=0,
            grid=(N,),
            in_specs=[
                pl.BlockSpec((1, Cin, XEXT), lambda n: (n, 0, 0)),
                pl.BlockSpec((Cout, 9 * Cin), lambda n: (0, 0)),
                pl.BlockSpec((Cout, 9 * Cout), lambda n: (0, 0)),
                pl.BlockSpec((Cout, 1), lambda n: (0, 0)),
                pl.BlockSpec((Cout, 1), lambda n: (0, 0)),
                pl.BlockSpec((1, C1W), lambda n: (0, 0)),
            ],
            out_specs=pl.BlockSpec((1, Cout, C2W), lambda n: (n, 0, 0)),
            scratch_shapes=[
                pltpu.VMEM((9 * Cin, C1W), f32),    # conv1 im2col staging
                pltpu.VMEM((9 * Cout, C2W), f32),   # conv2 im2col staging
            ],
        ),
        compiler_params=pltpu.CompilerParams(
            dimension_semantics=("parallel",)),
        cost_estimate=pl.CostEstimate(flops=flops, transcendentals=0,
                                      bytes_accessed=bytes_accessed),
    )(x_ext, w1m, w2m, b1, b2, mask)

    # Flat padded-stride grid -> NCHW (cheap XLA slice/reshape outside the kernel;
    # already in PyTorch's NCHW convention, no transpose needed).
    out = out_flat[:, :, :Np].reshape(N, Cout, Hp, Wp)[:, :, :H, :W]
    return out


def basic_block_ref(x, w1, w2, g1, b1, m1, v1, g2, b2, m2, v2, eps=1e-5):
    """Pure-JAX reference matching the PyTorch BasicBlock forward (eval BN)."""
    def conv(inp, w):
        return jax.lax.conv_general_dilated(
            inp, w, window_strides=(1, 1), padding=((1, 1), (1, 1)),
            dimension_numbers=('NCHW', 'OIHW', 'NCHW'))

    def bn(inp, g, b, m, v):
        return (g[None, :, None, None] * (inp - m[None, :, None, None])
                / jnp.sqrt(v + eps)[None, :, None, None]
                + b[None, :, None, None])

    out = jax.nn.relu(bn(conv(x, w1), g1, b1, m1, v1))
    out = bn(conv(out, w2), g2, b2, m2, v2)
    return jax.nn.relu(out + x)


if __name__ == "__main__":
    # BasicBlock(inplanes=4, planes=4, stride=1, downsample=None)
    N, C, H, W = 2, 4, 16, 16
    key = jax.random.PRNGKey(0)
    k = jax.random.split(key, 8)

    x = jax.random.normal(k[0], (N, C, H, W), jnp.float32)
    w1 = jax.random.normal(k[1], (C, C, 3, 3), jnp.float32) * 0.2   # conv1 (OIHW)
    w2 = jax.random.normal(k[2], (C, C, 3, 3), jnp.float32) * 0.2   # conv2 (OIHW)
    gamma1 = 1.0 + 0.1 * jax.random.normal(k[3], (C,), jnp.float32)
    beta1 = 0.1 * jax.random.normal(k[4], (C,), jnp.float32)
    mean1 = 0.1 * jax.random.normal(k[5], (C,), jnp.float32)
    var1 = 1.0 + 0.1 * jnp.abs(jax.random.normal(k[6], (C,), jnp.float32))
    gamma2 = 1.0 + 0.05 * jnp.arange(C, dtype=jnp.float32)
    beta2 = 0.02 * jnp.arange(C, dtype=jnp.float32)
    mean2 = 0.03 * jnp.arange(C, dtype=jnp.float32)
    var2 = 1.0 + 0.1 * jnp.arange(C, dtype=jnp.float32)

    out = basic_block_forward(x, w1, w2,
                              gamma1, beta1, mean1, var1,
                              gamma2, beta2, mean2, var2)
    out = jax.block_until_ready(out)

    ref = basic_block_ref(x, w1, w2,
                          gamma1, beta1, mean1, var1,
                          gamma2, beta2, mean2, var2)
    assert out.shape == (N, C, H, W)
    err = float(jnp.max(jnp.abs(out - ref)))
    assert jnp.allclose(out, ref, atol=1e-3, rtol=1e-3), err
    print("KERNEL_OK")
</pallas_src>

<mosaic_0001>
module attributes {stable_mosaic.version = 11 : i64} {
  func.func @kernel(%arg0: i32, %arg1: memref<1x4x640xf32, #tpu.memory_space<vmem>>, %arg2: memref<4x36xf32, #tpu.memory_space<vmem>>, %arg3: memref<4x36xf32, #tpu.memory_space<vmem>>, %arg4: memref<4x1xf32, #tpu.memory_space<vmem>>, %arg5: memref<4x1xf32, #tpu.memory_space<vmem>>, %arg6: memref<1x512xf32, #tpu.memory_space<vmem>>, %arg7: memref<1x4x384xf32, #tpu.memory_space<vmem>>, %arg8: memref<36x512xf32, #tpu.memory_space<vmem>>, %arg9: memref<36x384xf32, #tpu.memory_space<vmem>>) attributes {dimension_semantics = [#tpu.dimension_semantics<parallel>], iteration_bounds = array<i64: 2>, scalar_prefetch = 0 : i64, scratch_operands = 2 : i64, tpu.core_type = #tpu.core_type<tc>, window_params = [{transform_indices = @transform_0, window_bounds = array<i64: 1, 4, 640>}, {pipeline_mode = #tpu.pipeline_mode<synchronous>, transform_indices = @transform_1, window_bounds = array<i64: 4, 36>}, {pipeline_mode = #tpu.pipeline_mode<synchronous>, transform_indices = @transform_2, window_bounds = array<i64: 4, 36>}, {pipeline_mode = #tpu.pipeline_mode<synchronous>, transform_indices = @transform_3, window_bounds = array<i64: 4, 1>}, {pipeline_mode = #tpu.pipeline_mode<synchronous>, transform_indices = @transform_4, window_bounds = array<i64: 4, 1>}, {pipeline_mode = #tpu.pipeline_mode<synchronous>, transform_indices = @transform_5, window_bounds = array<i64: 1, 512>}, {transform_indices = @transform_6, window_bounds = array<i64: 1, 4, 384>}]} {
    %c0 = arith.constant 0 : index
    %c0_0 = arith.constant 0 : index
    %c0_1 = arith.constant 0 : index
    %0 = vector.load %arg1[%c0, %c0_0, %c0_1] : memref<1x4x640xf32, #tpu.memory_space<vmem>>, vector<1x4x640xf32>
    %1 = vector.shape_cast %0 : vector<1x4x640xf32> to vector<4x640xf32>
    %2 = vector.extract_strided_slice %1 {offsets = [0, 0], sizes = [4, 512], strides = [1, 1]} : vector<4x640xf32> to vector<4x512xf32>
    %c0_2 = arith.constant 0 : index
    %c0_3 = arith.constant 0 : index
    %3 = vector.load %arg8[%c0_2, %c0_3] : memref<36x512xf32, #tpu.memory_space<vmem>>, vector<4x512xf32>
    tpu.vector_store %arg8[%c0_2, %c0_3], %2 {strides = array<i32>} : memref<36x512xf32, #tpu.memory_space<vmem>>, vector<4x512xf32>,
    %4 = vector.extract_strided_slice %1 {offsets = [0, 1], sizes = [4, 512], strides = [1, 1]} : vector<4x640xf32> to vector<4x512xf32>
    %c4 = arith.constant 4 : index
    %c0_4 = arith.constant 0 : index
    %5 = vector.load %arg8[%c4, %c0_4] : memref<36x512xf32, #tpu.memory_space<vmem>>, vector<4x512xf32>
    tpu.vector_store %arg8[%c4, %c0_4], %4 {strides = array<i32>} : memref<36x512xf32, #tpu.memory_space<vmem>>, vector<4x512xf32>,
    %6 = vector.extract_strided_slice %1 {offsets = [0, 2], sizes = [4, 512], strides = [1, 1]} : vector<4x640xf32> to vector<4x512xf32>
    %c8 = arith.constant 8 : index
    %c0_5 = arith.constant 0 : index
    %7 = vector.load %arg8[%c8, %c0_5] : memref<36x512xf32, #tpu.memory_space<vmem>>, vector<4x512xf32>
    tpu.vector_store %arg8[%c8, %c0_5], %6 {strides = array<i32>} : memref<36x512xf32, #tpu.memory_space<vmem>>, vector<4x512xf32>,
    %8 = vector.extract_strided_slice %1 {offsets = [0, 18], sizes = [4, 512], strides = [1, 1]} : vector<4x640xf32> to vector<4x512xf32>
    %c12 = arith.constant 12 : index
    %c0_6 = arith.constant 0 : index
    %9 = vector.load %arg8[%c12, %c0_6] : memref<36x512xf32, #tpu.memory_space<vmem>>, vector<4x512xf32>
    tpu.vector_store %arg8[%c12, %c0_6], %8 {strides = array<i32>} : memref<36x512xf32, #tpu.memory_space<vmem>>, vector<4x512xf32>,
    %10 = vector.extract_strided_slice %1 {offsets = [0, 19], sizes = [4, 512], strides = [1, 1]} : vector<4x640xf32> to vector<4x512xf32>
    %c16 = arith.constant 16 : index
    %c0_7 = arith.constant 0 : index
    %11 = vector.load %arg8[%c16, %c0_7] : memref<36x512xf32, #tpu.memory_space<vmem>>, vector<4x512xf32>
    tpu.vector_store %arg8[%c16, %c0_7], %10 {strides = array<i32>} : memref<36x512xf32, #tpu.memory_space<vmem>>, vector<4x512xf32>,
    %12 = vector.extract_strided_slice %1 {offsets = [0, 20], sizes = [4, 512], strides = [1, 1]} : vector<4x640xf32> to vector<4x512xf32>
    %c20 = arith.constant 20 : index
    %c0_8 = arith.constant 0 : index
    %13 = vector.load %arg8[%c20, %c0_8] : memref<36x512xf32, #tpu.memory_space<vmem>>, vector<4x512xf32>
    tpu.vector_store %arg8[%c20, %c0_8], %12 {strides = array<i32>} : memref<36x512xf32, #tpu.memory_space<vmem>>, vector<4x512xf32>,
    %14 = vector.extract_strided_slice %1 {offsets = [0, 36], sizes = [4, 512], strides = [1, 1]} : vector<4x640xf32> to vector<4x512xf32>
    %c24 = arith.constant 24 : index
    %c0_9 = arith.constant 0 : index
    %15 = vector.load %arg8[%c24, %c0_9] : memref<36x512xf32, #tpu.memory_space<vmem>>, vector<4x512xf32>
    tpu.vector_store %arg8[%c24, %c0_9], %14 {strides = array<i32>} : memref<36x512xf32, #tpu.memory_space<vmem>>, vector<4x512xf32>,
    %16 = vector.extract_strided_slice %1 {offsets = [0, 37], sizes = [4, 512], strides = [1, 1]} : vector<4x640xf32> to vector<4x512xf32>
    %c28 = arith.constant 28 : index
    %c0_10 = arith.constant 0 : index
    %17 = vector.load %arg8[%c28, %c0_10] : memref<36x512xf32, #tpu.memory_space<vmem>>, vector<4x512xf32>
    tpu.vector_store %arg8[%c28, %c0_10], %16 {strides = array<i32>} : memref<36x512xf32, #tpu.memory_space<vmem>>, vector<4x512xf32>,
    %18 = vector.extract_strided_slice %1 {offsets = [0, 38], sizes = [4, 512], strides = [1, 1]} : vector<4x640xf32> to vector<4x512xf32>
    %c32 = arith.constant 32 : index
    %c0_11 = arith.constant 0 : index
    %19 = vector.load %arg8[%c32, %c0_11] : memref<36x512xf32, #tpu.memory_space<vmem>>, vector<4x512xf32>
    tpu.vector_store %arg8[%c32, %c0_11], %18 {strides = array<i32>} : memref<36x512xf32, #tpu.memory_space<vmem>>, vector<4x512xf32>,
    %c0_12 = arith.constant 0 : index
    %c0_13 = arith.constant 0 : index
    %20 = vector.load %arg2[%c0_12, %c0_13] : memref<4x36xf32, #tpu.memory_space<vmem>>, vector<4x36xf32>
    %c0_14 = arith.constant 0 : index
    %c0_15 = arith.constant 0 : index
    %21 = vector.load %arg8[%c0_14, %c0_15] : memref<36x512xf32, #tpu.memory_space<vmem>>, vector<36x512xf32>
    %cst = arith.constant dense<0.000000e+00> : vector<4x512xf32>
    %22 = tpu.matmul %20, %21, %cst {dimension_numbers = #tpu.dot_dimension_numbers<[1], [0], [0], [1], [0, 0, 1, 1], [], []>} : vector<4x36xf32>, vector<36x512xf32>, vector<4x512xf32> -> vector<4x512xf32>
    %c0_16 = arith.constant 0 : index
    %c0_17 = arith.constant 0 : index
    %23 = vector.load %arg4[%c0_16, %c0_17] : memref<4x1xf32, #tpu.memory_space<vmem>>, vector<4x1xf32>
    %24 = vector.broadcast %23 : vector<4x1xf32> to vector<4x512xf32>
    %25 = arith.addf %22, %24 : vector<4x512xf32>
    %cst_18 = arith.constant 0.000000e+00 : f32
    %26 = vector.broadcast %cst_18 : f32 to vector<4x512xf32>
    %27 = arith.maximumf %25, %26 : vector<4x512xf32>
    %c0_19 = arith.constant 0 : index
    %c0_20 = arith.constant 0 : index
    %28 = vector.load %arg6[%c0_19, %c0_20] : memref<1x512xf32, #tpu.memory_space<vmem>>, vector<1x512xf32>
    %29 = vector.broadcast %28 : vector<1x512xf32> to vector<4x512xf32>
    %30 = arith.mulf %27, %29 : vector<4x512xf32>
    %31 = vector.extract_strided_slice %30 {offsets = [0, 0], sizes = [4, 384], strides = [1, 1]} : vector<4x512xf32> to vector<4x384xf32>
    %c0_21 = arith.constant 0 : index
    %c0_22 = arith.constant 0 : index
    %32 = vector.load %arg9[%c0_21, %c0_22] : memref<36x384xf32, #tpu.memory_space<vmem>>, vector<4x384xf32>
    tpu.vector_store %arg9[%c0_21, %c0_22], %31 {strides = array<i32>} : memref<36x384xf32, #tpu.memory_space<vmem>>, vector<4x384xf32>,
    %33 = vector.extract_strided_slice %30 {offsets = [0, 1], sizes = [4, 384], strides = [1, 1]} : vector<4x512xf32> to vector<4x384xf32>
    %c4_23 = arith.constant 4 : index
    %c0_24 = arith.constant 0 : index
    %34 = vector.load %arg9[%c4_23, %c0_24] : memref<36x384xf32, #tpu.memory_space<vmem>>, vector<4x384xf32>
    tpu.vector_store %arg9[%c4_23, %c0_24], %33 {strides = array<i32>} : memref<36x384xf32, #tpu.memory_space<vmem>>, vector<4x384xf32>,
    %35 = vector.extract_strided_slice %30 {offsets = [0, 2], sizes = [4, 384], strides = [1, 1]} : vector<4x512xf32> to vector<4x384xf32>
    %c8_25 = arith.constant 8 : index
    %c0_26 = arith.constant 0 : index
    %36 = vector.load %arg9[%c8_25, %c0_26] : memref<36x384xf32, #tpu.memory_space<vmem>>, vector<4x384xf32>
    tpu.vector_store %arg9[%c8_25, %c0_26], %35 {strides = array<i32>} : memref<36x384xf32, #tpu.memory_space<vmem>>, vector<4x384xf32>,
    %37 = vector.extract_strided_slice %30 {offsets = [0, 18], sizes = [4, 384], strides = [1, 1]} : vector<4x512xf32> to vector<4x384xf32>
    %c12_27 = arith.constant 12 : index
    %c0_28 = arith.constant 0 : index
    %38 = vector.load %arg9[%c12_27, %c0_28] : memref<36x384xf32, #tpu.memory_space<vmem>>, vector<4x384xf32>
    tpu.vector_store %arg9[%c12_27, %c0_28], %37 {strides = array<i32>} : memref<36x384xf32, #tpu.memory_space<vmem>>, vector<4x384xf32>,
    %39 = vector.extract_strided_slice %30 {offsets = [0, 19], sizes = [4, 384], strides = [1, 1]} : vector<4x512xf32> to vector<4x384xf32>
    %c16_29 = arith.constant 16 : index
    %c0_30 = arith.constant 0 : index
    %40 = vector.load %arg9[%c16_29, %c0_30] : memref<36x384xf32, #tpu.memory_space<vmem>>, vector<4x384xf32>
    tpu.vector_store %arg9[%c16_29, %c0_30], %39 {strides = array<i32>} : memref<36x384xf32, #tpu.memory_space<vmem>>, vector<4x384xf32>,
    %41 = vector.extract_strided_slice %30 {offsets = [0, 20], sizes = [4, 384], strides = [1, 1]} : vector<4x512xf32> to vector<4x384xf32>
    %c20_31 = arith.constant 20 : index
    %c0_32 = arith.constant 0 : index
    %42 = vector.load %arg9[%c20_31, %c0_32] : memref<36x384xf32, #tpu.memory_space<vmem>>, vector<4x384xf32>
    tpu.vector_store %arg9[%c20_31, %c0_32], %41 {strides = array<i32>} : memref<36x384xf32, #tpu.memory_space<vmem>>, vector<4x384xf32>,
    %43 = vector.extract_strided_slice %30 {offsets = [0, 36], sizes = [4, 384], strides = [1, 1]} : vector<4x512xf32> to vector<4x384xf32>
    %c24_33 = arith.constant 24 : index
    %c0_34 = arith.constant 0 : index
    %44 = vector.load %arg9[%c24_33, %c0_34] : memref<36x384xf32, #tpu.memory_space<vmem>>, vector<4x384xf32>
    tpu.vector_store %arg9[%c24_33, %c0_34], %43 {strides = array<i32>} : memref<36x384xf32, #tpu.memory_space<vmem>>, vector<4x384xf32>,
    %45 = vector.extract_strided_slice %30 {offsets = [0, 37], sizes = [4, 384], strides = [1, 1]} : vector<4x512xf32> to vector<4x384xf32>
    %c28_35 = arith.constant 28 : index
    %c0_36 = arith.constant 0 : index
    %46 = vector.load %arg9[%c28_35, %c0_36] : memref<36x384xf32, #tpu.memory_space<vmem>>, vector<4x384xf32>
    tpu.vector_store %arg9[%c28_35, %c0_36], %45 {strides = array<i32>} : memref<36x384xf32, #tpu.memory_space<vmem>>, vector<4x384xf32>,
    %47 = vector.extract_strided_slice %30 {offsets = [0, 38], sizes = [4, 384], strides = [1, 1]} : vector<4x512xf32> to vector<4x384xf32>
    %c32_37 = arith.constant 32 : index
    %c0_38 = arith.constant 0 : index
    %48 = vector.load %arg9[%c32_37, %c0_38] : memref<36x384xf32, #tpu.memory_space<vmem>>, vector<4x384xf32>
    tpu.vector_store %arg9[%c32_37, %c0_38], %47 {strides = array<i32>} : memref<36x384xf32, #tpu.memory_space<vmem>>, vector<4x384xf32>,
    %c0_39 = arith.constant 0 : index
    %c0_40 = arith.constant 0 : index
    %49 = vector.load %arg3[%c0_39, %c0_40] : memref<4x36xf32, #tpu.memory_space<vmem>>, vector<4x36xf32>
    %c0_41 = arith.constant 0 : index
    %c0_42 = arith.constant 0 : index
    %50 = vector.load %arg9[%c0_41, %c0_42] : memref<36x384xf32, #tpu.memory_space<vmem>>, vector<36x384xf32>
    %cst_43 = arith.constant dense<0.000000e+00> : vector<4x384xf32>
    %51 = tpu.matmul %49, %50, %cst_43 {dimension_numbers = #tpu.dot_dimension_numbers<[1], [0], [0], [1], [0, 0, 1, 1], [], []>} : vector<4x36xf32>, vector<36x384xf32>, vector<4x384xf32> -> vector<4x384xf32>
    %c0_44 = arith.constant 0 : index
    %c0_45 = arith.constant 0 : index
    %52 = vector.load %arg5[%c0_44, %c0_45] : memref<4x1xf32, #tpu.memory_space<vmem>>, vector<4x1xf32>
    %53 = vector.broadcast %52 : vector<4x1xf32> to vector<4x384xf32>
    %54 = arith.addf %51, %53 : vector<4x384xf32>
    %55 = vector.extract_strided_slice %1 {offsets = [0, 38], sizes = [4, 384], strides = [1, 1]} : vector<4x640xf32> to vector<4x384xf32>
    %56 = arith.addf %54, %55 : vector<4x384xf32>
    %cst_46 = arith.constant 0.000000e+00 : f32
    %57 = vector.broadcast %cst_46 : f32 to vector<4x384xf32>
    %58 = arith.maximumf %56, %57 : vector<4x384xf32>
    %c0_47 = arith.constant 0 : index
    %c0_48 = arith.constant 0 : index
    %c0_49 = arith.constant 0 : index
    %59 = vector.load %arg7[%c0_47, %c0_48, %c0_49] : memref<1x4x384xf32, #tpu.memory_space<vmem>>, vector<1x4x384xf32>
    %60 = vector.shape_cast %59 : vector<1x4x384xf32> to vector<4x384xf32>
    %61 = vector.shape_cast %58 : vector<4x384xf32> to vector<1x4x384xf32>
    tpu.vector_store %arg7[%c0_47, %c0_48, %c0_49], %61 {strides = array<i32>} : memref<1x4x384xf32, #tpu.memory_space<vmem>>, vector<1x4x384xf32>,
    return
  }
  func.func @transform_0(%arg0: i32) -> (i32, i32, i32) {
    %c0_i32 = arith.constant 0 : i32
    %c0_i32_0 = arith.constant 0 : i32
    %c0_i32_1 = arith.constant 0 : i32
    return %arg0, %c0_i32, %c0_i32_0 : i32, i32, i32
  }
  func.func @transform_1(%arg0: i32) -> (i32, i32) {
    %c0_i32 = arith.constant 0 : i32
    %c0_i32_0 = arith.constant 0 : i32
    %c0_i32_1 = arith.constant 0 : i32
    return %c0_i32, %c0_i32_0 : i32, i32
  }
  func.func @transform_2(%arg0: i32) -> (i32, i32) {
    %c0_i32 = arith.constant 0 : i32
    %c0_i32_0 = arith.constant 0 : i32
    %c0_i32_1 = arith.constant 0 : i32
    return %c0_i32, %c0_i32_0 : i32, i32
  }
  func.func @transform_3(%arg0: i32) -> (i32, i32) {
    %c0_i32 = arith.constant 0 : i32
    %c0_i32_0 = arith.constant 0 : i32
    %c0_i32_1 = arith.constant 0 : i32
    return %c0_i32, %c0_i32_0 : i32, i32
  }
  func.func @transform_4(%arg0: i32) -> (i32, i32) {
    %c0_i32 = arith.constant 0 : i32
    %c0_i32_0 = arith.constant 0 : i32
    %c0_i32_1 = arith.constant 0 : i32
    return %c0_i32, %c0_i32_0 : i32, i32
  }
  func.func @transform_5(%arg0: i32) -> (i32, i32) {
    %c0_i32 = arith.constant 0 : i32
    %c0_i32_0 = arith.constant 0 : i32
    %c0_i32_1 = arith.constant 0 : i32
    return %c0_i32, %c0_i32_0 : i32, i32
  }
  func.func @transform_6(%arg0: i32) -> (i32, i32, i32) {
    %c0_i32 = arith.constant 0 : i32
    %c0_i32_0 = arith.constant 0 : i32
    %c0_i32_1 = arith.constant 0 : i32
    return %arg0, %c0_i32, %c0_i32_0 : i32, i32, i32
  }
}

</mosaic_0001>

<bundles_post_ra>
// kernel: tpu_custom_call.1
= control target key start
LH: loop header
LB: loop body
LE: loop exit
PB: predicated region body
PF: predicated region fallthrough
CT: control target
= control target key end

     0   :  { %11 = vsyncpa [#allocation5], 0  ;;  %s1717_s0 = inlined_call_operand.hbm [shape: f32[2,4,640], index: 0, kind: input, shape index: {}]   ;;  %s1718_s1 = inlined_call_operand.vmem [shape: f32[4,36], index: 1, kind: input, shape index: {}]   ;;  %s1719_s2 = inlined_call_operand.vmem [shape: f32[4,36], index: 2, kind: input, shape index: {}]   ;;  %s1720_s3 = inlined_call_operand.vmem [shape: f32[4,1], index: 3, kind: input, shape index: {}]   ;;  %s1721_s4 = inlined_call_operand.vmem [shape: f32[4,1], index: 4, kind: input, shape index: {}]   ;;  %s1722_s5 = inlined_call_operand.vmem [shape: f32[1,512], index: 5, kind: input, shape index: {}]   ;;  %s1723_s6 = inlined_call_operand.hbm [shape: f32[2,4,384], index: 6, kind: output, shape index: {}]  }
   0x1   :  { %13 = vsyncpa [#allocation5 + $0x1], 0 }
   0x2   :  { %14 = vsyncpa [#allocation6], 0 }
   0x3   :  { %16 = vsyncpa [#allocation6 + $0x1], 0  ;;  %s1388_s21 = smov 0   ;;  %s1390_s22 = smov 0  }
   0x4   :  { %s1392_s23 = smov 0   ;;  %s1394_s24 = smov 0  }
   0x5 LB: > { %s1409_s25 = sadd.s32 4294967295, %s1337_s24   ;;  %s1104_s26 = sadd.s32 4294967294, %s1337_s24   ;;  %s1337_s24 = sphi %s1394_s24, %s1737_s24   ;;  %s1333_s23 = sphi %s1392_s23, %s1736_s23   ;;  %s1329_s22 = sphi %s1390_s22, %s1735_s22   ;;  %s1325_s21 = sphi %s1388_s21, %s1734_s21  }
   0x6   : > { %s1413_s27 = sadd.s32 1, %s1337_s24   ;;  %s29_s28 = sadd.s32 1, %s1333_s23 }
   0x7   : > { %s26_s29 = ssub.s32 %s1337_s24, %s1413_s27  ;;  %p36_p0 = scmp.ne.s32.totalorder %s1333_s23, %s1329_s22 }
   0x8   : > { %p27_p1 = scmp.eq.s32.totalorder %s26_s29, 0  ;;  %p37_p2 = scmp.eq.s32.totalorder %s1337_s24, 0 }
   0x9   : > { %p42_p3 = scmp.ne.s32.totalorder %s1329_s22, %s1325_s21  ;;  %p43_p4 = scmp.eq.s32.totalorder %s1409_s25, 0 }
   0xa   : > { %s1425_s30 = scalar_select %p27_p1, %s1333_s23, %s29_s28  }
   0xb   : > { %p38_p5 = por %p37_p2, %p36_p0  ;;  %p1427_p6 = por %p43_p4, %p42_p3 }
   0xc   : > { %p171_p7 = scmp.eq.s32.totalorder %s1409_s25, 1  ;;  %p177_p8 = scmp.eq.s32.totalorder %s1104_s26, 1 }
   0xd   : > { %p1189_p10 = scmp.lt.s32.totalorder %s1337_s24, 2  ;;  %s212_s10 = sand.u32 1, %s1333_s23  }
   0xe   : > { %p1434_p11 = por %p171_p7, %p36_p0  ;;  %p1438_p12 = por %p177_p8, %p42_p3 }
   0xf   : > { %s1173_s11 = smul.u32 320, %s1337_s24  ;;  %p1449_p13 = pnand %p1189_p10, %p38_p5 }
  0x10   : > { %s1726_s8 = scalar_select %p1434_p11, 1, 0 }
  0x11   : > { %s1727_s9 = scalar_select %p1438_p12, 1, 0 }
  0x12   : > { %s1172_s12 = smul.u32 20, %s212_s10  ;;  %s1447_s15 = scalar_lea.hbm %s1717_s0, %s1173_s11 }
  0x13   : > { %s213_s19 = scalar_lea.sflag [#allocation5], %s212_s10  ;;  %s1241_s20 = scalar_lea.hbm %s1447_s15, 320 }
  0x14   : > { %s216_s17 = scalar_lea.vmem [#allocation4], %s1172_s12  ;;  %p1242_p2 = scmp.ne.s32.totalorder %s1447_s15, %s1241_s20 }
  0x15   : > { %s224_s18 = sshll.u32 %s216_s17, 4  ;;  %p1243_p3 = pneg %p1449_p13  ;;  %s1454_s18 = int_to_ptr.vmem [resolvable:$true] %s224_s18 }
  0x16   : > { %s1246_s29 = scalar_lea.hbm %s1717_s0, 640  ;;  %p1247_p7 = scmp.lt.u32.totalorder %s1447_s15, %s1717_s0 }
  0x17   : > { %p1244_p4 = pnand %p1243_p3, %p1242_p2  ;;  %p1248_p8 = scmp.lt.u32.totalorder %s1246_s29, %s1241_s20 }
  0x18   : > { %p1250_p9 = scmp.lt.u32.totalorder %s1241_s20, %s1447_s15 }
  0x19   : > { %p1245_p5 = pneg %p1244_p4  ;;  %p1249_p10 = por %p1248_p8, %p1247_p7 }
  0x1b   : > { %p1251_p0 = por %p1250_p9, %p1249_p10 }
  0x1d   : > { %p1252_p1 = pnand %p1251_p0, %p1245_p5 }
  0x1f   : > { %1255 = shalt.err (!%p1252_p1)
}
  0x20   : > { %s1256_s10 = scalar_lea.vmem %s1454_s18, 320  ;;  %s1339_s12 = smov [#allocation4]  }
  0x21   : > { %p1257_p2 = scmp.ne.s32.totalorder %s1454_s18, %s1256_s10  ;;  %s1261_s14 = sshll.u32 %s1339_s12, 4  ;;  %s1262_s14 = int_to_ptr.vmem [resolvable:$false] %s1261_s14 }
  0x22   : > { %s1263_s17 = scalar_lea.vmem %s1262_s14, 640  ;;  %p1264_p11 = scmp.lt.s32.totalorder %s1454_s18, %s1262_s14 }
  0x23   : > { %p1259_p4 = pnand %p1257_p2, %p1243_p3  ;;  %p1265_p7 = scmp.lt.s32.totalorder %s1263_s17, %s1256_s10 }
  0x25   : > { %p1260_p12 = pneg %p1259_p4  ;;  %p1266_p8 = por %p1265_p7, %p1264_p11 }
  0x27   : > { %p1267_p9 = pnand %p1266_p8, %p1260_p12 }
  0x29   : > { %1270 = shalt.err (!%p1267_p9)
}
  0x2a   : > { %1184 = dma.hbm_to_vmem [thread:$0]  (!%p1449_p13), %s1447_s15, 320, %s1454_s18, %s213_s19  }
  0x2b   : > { %p1729_p0 = scmp.lt.s32.totalorder %s1337_s24, 3  ;;  %p1730_p1 = scmp.ge.s32.totalorder %s1337_s24, 1 }
  0x2d   : > { %p230_p3 = pnand %p1730_p1, %p1729_p0 }
  0x2e   : > { %s1487_s20 = sand.u32 (!%p230_p3), 1, %s1329_s22  }
  0x2f   : > { %233 = sbr.rel (%p230_p3) target bundleno = 897 (0x381), region = 44  ;;  %s236_s28 = scalar_lea.sflag (!%p230_p3), [#allocation5], %s1487_s20 }
  0x30   : > { %s1174_s26 = smul.u32 (!%p230_p3), 20, %s1487_s20 }
  0x32   : > { %s239_s29 = scalar_lea.vmem (!%p230_p3), [#allocation4], %s1174_s26 }
  0x36   : > { %1316 = dma.done.wait (%p1427_p6), %s236_s28, 320  }
  0x37   : > { %1318 = vsyncadd (%p1427_p6), %s236_s28, 4294966976  ;;  %v269_v0 = vld [vmem:[%s239_s29 + $0x8] sm:$0xff]  ;;  %v268_v1 = vld [vmem:[%s239_s29] sm:$0xff]  ;;  %s1340_s15 = smov 126   ;;  %s1341_s16 = smov 127   ;;  %v1348_v8 = vmov 0.0  }
  0x38   : > { %312 = vrot.lane.b32.xlu1 %v269_v0, %s1340_s15  ;;  %279 = vst [vmem:[#allocation2 + $0x10] sm:$0xf] %v269_v0  ;;  %287 = vrot.lane.b32.xlu0 %v268_v1, %s1341_s16  ;;  %277 = vst [vmem:[#allocation2] sm:$0xf] %v268_v1  ;;  %v273_v2 = vcombine.high %v268_v1, %v268_v1  ;;  %v274_v3 = vcombine.high %v269_v0, %v269_v0  ;;  %s1342_s18 = smov 110   ;;  %s1343_s7 = smov 109  }
  0x39   : > { %v283_v4 = vcombine.low %v269_v0, %v269_v0  ;;  %v282_v5 = vcombine.low %v268_v1, %v268_v1  ;;  %v270_v6 = vld [vmem:[%s239_s29 + $0x10] sm:$0xf]  ;;  %s1344_s19 = smov 108   ;;  %s1345_s11 = smov 92   ;;  %577 = vmatprep.mubr.f32.mxu0 %v1348_v8  ;;  %648 = vmatprep.mubr.f32.mxu1 %v1348_v8  ;;  %v1349_v9 = vmov 0   ;;  %vm318_vm0 = vcmask 1031168  }
  0x3a   : > { %278 = vst [vmem:[#allocation2 + $0x8] sm:$0xf] %v273_v2  ;;  %280 = vst [vmem:[#allocation2 + $0x18] sm:$0xf] %v274_v3  ;;  %v284_v7 = vcombine.low %v270_v6, %v270_v6  ;;  %s1346_s13 = smov 91   ;;  %s1347_s10 = smov 90   ;;  %1235 = vset.pattern.permute.xlu0 %v1349_v9 }
  0x3b   : > { %v490_v10 = vld [vmem:[%s1720_s3] sm:$0xf]  ;;  %vm295_vm1 = vcmask 1039360   ;;  %vm341_vm2 = vcmask 900096   ;;  %vm364_vm3 = vcmask 891904   ;;  %vm387_vm4 = vcmask 883712  }
  0x3c   : > { %333 = vrot.lane.b32.xlu0 %v268_v1, %s1342_s18  ;;  %310 = vrot.lane.b32.xlu1 %v273_v2, %s1340_s15  ;;  %vm410_vm5 = vcmask 752640   ;;  %vm433_vm6 = vcmask 744448   ;;  %vm456_vm7 = vcmask 736256   ;;  %vm500_vm8 = vcmask 1043456   ;;  %p1731_p11 = scmp.ne.s32.totalorder %s1726_s8, 0  ;;  %s1352_s28 = smov [#allocation7]  }
  0x3d   : > { %vm496_vm9 = vcmask 293888   ;;  %vm1351_vm10 = vmmov 0   ;;  %s1275_s29 = sshll.u32 %s1352_s28, 4  ;;  %s1276_s29 = int_to_ptr.vmem [resolvable:$false] %s1275_s29 }
  0x40   : > { %289 = vrot.lane.b32.xlu0 %v283_v4, %s1341_s16  ;;  %335 = vrot.lane.b32.xlu1 %v283_v4, %s1342_s18 }
  0x44   : > { %285 = vrot.lane.b32.xlu0 %v282_v5, %s1341_s16  ;;  %291 = vrot.lane.b32.xlu1 %v269_v0, %s1341_s16 }
  0x48   : > { %293 = vrot.lane.b32.xlu0 %v284_v7, %s1341_s16  ;;  %308 = vrot.lane.b32.xlu1 %v268_v1, %s1340_s15 }
  0x4c   : > { %314 = vrot.lane.b32.xlu0 %v274_v3, %s1340_s15  ;;  %316 = vrot.lane.b32.xlu1 %v270_v6, %s1340_s15 }
  0x50   : > { %331 = vrot.lane.b32.xlu0 %v282_v5, %s1342_s18  ;;  %337 = vrot.lane.b32.xlu1 %v269_v0, %s1342_s18 }
  0x54   : > { %339 = vrot.lane.b32.xlu0 %v284_v7, %s1342_s18  ;;  %356 = vrot.lane.b32.xlu1 %v273_v2, %s1343_s7 }
  0x58   : > { %358 = vrot.lane.b32.xlu0 %v269_v0, %s1343_s7  ;;  %379 = vrot.lane.b32.xlu1 %v268_v1, %s1344_s19 }
  0x5c   : > { %381 = vrot.lane.b32.xlu0 %v283_v4, %s1344_s19  ;;  %402 = vrot.lane.b32.xlu1 %v273_v2, %s1345_s11 }
  0x60   : > { %404 = vrot.lane.b32.xlu0 %v269_v0, %s1345_s11  ;;  %425 = vrot.lane.b32.xlu1 %v268_v1, %s1346_s13 }
  0x64   : > { %427 = vrot.lane.b32.xlu0 %v283_v4, %s1346_s13  ;;  %354 = vrot.lane.b32.xlu1 %v268_v1, %s1343_s7 }
  0x68   : > { %360 = vrot.lane.b32.xlu0 %v274_v3, %s1343_s7  ;;  %362 = vrot.lane.b32.xlu1 %v270_v6, %s1343_s7 }
  0x6c   : > { %377 = vrot.lane.b32.xlu0 %v282_v5, %s1344_s19  ;;  %383 = vrot.lane.b32.xlu1 %v269_v0, %s1344_s19 }
  0x70   : > { %385 = vrot.lane.b32.xlu0 %v284_v7, %s1344_s19  ;;  %400 = vrot.lane.b32.xlu1 %v268_v1, %s1345_s11 }
  0x74   : > { %406 = vrot.lane.b32.xlu0 %v274_v3, %s1345_s11  ;;  %408 = vrot.lane.b32.xlu1 %v270_v6, %s1345_s11 }
  0x78   : > { %423 = vrot.lane.b32.xlu0 %v282_v5, %s1346_s13  ;;  %429 = vrot.lane.b32.xlu1 %v269_v0, %s1346_s13 }
  0x7c   : > { %431 = vrot.lane.b32.xlu0 %v284_v7, %s1346_s13  ;;  %448 = vrot.lane.b32.xlu1 %v273_v2, %s1347_s10 }
  0x80   : > { %450 = vrot.lane.b32.xlu0 %v269_v0, %s1347_s10  ;;  %446 = vrot.lane.b32.xlu1 %v268_v1, %s1347_s10 }
  0x84   : > { %452 = vrot.lane.b32.xlu0 %v274_v3, %s1347_s10  ;;  %454 = vrot.lane.b32.xlu1 %v270_v6, %s1347_s10 }
  0x88   : > { %493 = vperm.xlu0 %1235, %v490_v10  }
  0xaa   : > { %v313_v11 = vpop.permute.xlu1 %312  ;;  %v288_v12 = vpop.permute.xlu0 %287 }
  0xae   : > { %v334_v13 = vpop.permute.xlu0 %333  ;;  %v311_v14 = vpop.permute.xlu1 %310 }
  0xaf   : > { %v320_v15 = vsel %vm318_vm0, %v311_v14, %v313_v11 }
  0xb0   : > { %328 = vst [vmem:[#allocation2 + $0x28] sm:$0xf] %v320_v15 }
  0xb2   : > { %v290_v16 = vpop.permute.xlu0 %289  ;;  %v336_v17 = vpop.permute.xlu1 %335 }
  0xb3   : > { %v297_v18 = vsel %vm295_vm1, %v288_v12, %v290_v16  ;;  %v343_v19 = vsel %vm341_vm2, %v334_v13, %v336_v17 }
  0xb4   : > { %305 = vst [vmem:[#allocation2 + $0x8] sm:$0xf0] %v297_v18  ;;  %351 = vst [vmem:[#allocation2 + $0x28] sm:$0xf0] %v343_v19 }
  0xb6   : > { %v286_v20 = vpop.permute.xlu0 %285  ;;  %v292_v21 = vpop.permute.xlu1 %291 }
  0xb7   : > { %v296_v22 = vsel %vm295_vm1, %v286_v20, %v288_v12  ;;  %v298_v23 = vsel %vm295_vm1, %v290_v16, %v292_v21 }
  0xb8   : > { %304 = vst [vmem:[#allocation2] sm:$0xf0] %v296_v22  ;;  %306 = vst [vmem:[#allocation2 + $0x10] sm:$0xf0] %v298_v23 }
  0xba   : > { %v294_v24 = vpop.permute.xlu0 %293  ;;  %v309_v25 = vpop.permute.xlu1 %308 }
  0xbb   : > { %v299_v26 = vsel %vm295_vm1, %v292_v21, %v294_v24  ;;  %v319_v27 = vsel %vm318_vm0, %v309_v25, %v311_v14  ;;  %v471_v28 = vld [vmem:[#allocation2 + $0x8] sm:$0xff] }
  0xbc   : > { %v475_v29 = vld [vmem:[#allocation2 + $0x28] sm:$0xff]  ;;  %307 = vst [vmem:[#allocation2 + $0x18] sm:$0xf0] %v299_v26  ;;  %327 = vst [vmem:[#allocation2 + $0x20] sm:$0xf] %v319_v27 }
  0xbd   : > { %v1142_v30 = vpack.c.bf16 %v475_v29, %v471_v28 }
  0xbe   : > { %v315_v31 = vpop.permute.xlu0 %314  ;;  %v317_v32 = vpop.permute.xlu1 %316 }
  0xbf   : > { %1143 = vmatprep.subr.bf16.mxu0 %v1142_v30  ;;  %v321_v33 = vsel %vm318_vm0, %v313_v11, %v315_v31  ;;  %v322_v34 = vsel %vm318_vm0, %v315_v31, %v317_v32  ;;  %v470_v45 = vld [vmem:[#allocation2] sm:$0xff]  ;;  %v472_v55 = vld [vmem:[#allocation2 + $0x10] sm:$0xff] }
  0xc0   : > { %329 = vst [vmem:[#allocation2 + $0x30] sm:$0xf] %v321_v33  ;;  %330 = vst [vmem:[#allocation2 + $0x38] sm:$0xf] %v322_v34 }
  0xc2   : > { %v332_v35 = vpop.permute.xlu0 %331  ;;  %v338_v36 = vpop.permute.xlu1 %337 }
  0xc3   : > { %v342_v37 = vsel %vm341_vm2, %v332_v35, %v334_v13  ;;  %v344_v38 = vsel %vm341_vm2, %v336_v17, %v338_v36  ;;  %v473_v52 = vld [vmem:[#allocation2 + $0x18] sm:$0xff] }
  0xc4   : > { %350 = vst [vmem:[#allocation2 + $0x20] sm:$0xf0] %v342_v37  ;;  %352 = vst [vmem:[#allocation2 + $0x30] sm:$0xf0] %v344_v38 }
  0xc6   : > { %v340_v39 = vpop.permute.xlu0 %339  ;;  %v357_v40 = vpop.permute.xlu1 %356 }
  0xc7   : > { %v345_v41 = vsel %vm341_vm2, %v338_v36, %v340_v39 }
  0xc8   : > { %353 = vst [vmem:[#allocation2 + $0x38] sm:$0xf0] %v345_v41 }
  0xca   : > { %v359_v42 = vpop.permute.xlu0 %358  ;;  %v380_v43 = vpop.permute.xlu1 %379 }
  0xcb   : > { %v366_v44 = vsel %vm364_vm3, %v357_v40, %v359_v42  ;;  %v474_v46 = vld [vmem:[#allocation2 + $0x20] sm:$0xff]  ;;  %v476_v50 = vld [vmem:[#allocation2 + $0x30] sm:$0xff] }
  0xcc   : > { %374 = vst [vmem:[#allocation2 + $0x48] sm:$0xf] %v366_v44  ;;  %v1144_v47 = vpack.c.bf16 %v474_v46, %v470_v45  ;;  %v1152_v56 = vpack.c.bf16 %v476_v50, %v472_v55  ;;  %v469_v44 = vld [vmem:[%s1718_s1] sm:$0xf] }
  0xce   : > { %v382_v48 = vpop.permute.xlu0 %381  ;;  %v403_v49 = vpop.permute.xlu1 %402  ;;  %1145 = vmatpush1.bf16.msra.mxu0 %v1144_v47 }
  0xcf   : > { %v389_v51 = vsel %vm387_vm4, %v380_v43, %v382_v48  ;;  %v477_v53 = vld [vmem:[#allocation2 + $0x38] sm:$0xff] }
  0xd0   : > { %397 = vst [vmem:[#allocation2 + $0x48] sm:$0xf0] %v389_v51  ;;  %v1150_v54 = vpack.c.bf16 %v477_v53, %v473_v52  ;;  %v659_v53 = vld [vmem:[%s1722_s5] sm:$0xf] }
  0xd2   : > { %v405_v57 = vpop.permute.xlu0 %404  ;;  %1151 = vmatprep.subr.bf16.mxu1 %v1150_v54  ;;  %v426_v58 = vpop.permute.xlu1 %425 }
  0xd3   : > { %v412_v59 = vsel %vm410_vm5, %v403_v49, %v405_v57  ;;  %1153 = vmatpush1.bf16.msra.mxu1 %v1152_v56 }
  0xd4   : > { %420 = vst [vmem:[#allocation2 + $0x68] sm:$0xf] %v412_v59 }
  0xd6   : > { %v428_v60 = vpop.permute.xlu0 %427  ;;  %v355_v61 = vpop.permute.xlu1 %354 }
  0xd7   : > { %v435_v62 = vsel %vm433_vm6, %v426_v58, %v428_v60  ;;  %v365_v63 = vsel %vm364_vm3, %v355_v61, %v357_v40  ;;  %v479_v9 = vld [vmem:[#allocation2 + $0x48] sm:$0xff] }
  0xd8   : > { %443 = vst [vmem:[#allocation2 + $0x68] sm:$0xf0] %v435_v62  ;;  %373 = vst [vmem:[#allocation2 + $0x40] sm:$0xf] %v365_v63 }
  0xda   : > { %v361_v0 = vpop.permute.xlu0 %360  ;;  %v363_v1 = vpop.permute.xlu1 %362 }
  0xdb   : > { %v367_v2 = vsel %vm364_vm3, %v359_v42, %v361_v0  ;;  %v368_v3 = vsel %vm364_vm3, %v361_v0, %v363_v1 }
  0xdc   : > { %375 = vst [vmem:[#allocation2 + $0x50] sm:$0xf] %v367_v2  ;;  %376 = vst [vmem:[#allocation2 + $0x58] sm:$0xf] %v368_v3 }
  0xde   : > { %v378_v4 = vpop.permute.xlu0 %377  ;;  %v384_v5 = vpop.permute.xlu1 %383 }
  0xdf   : > { %v388_v6 = vsel %vm387_vm4, %v378_v4, %v380_v43  ;;  %v390_v7 = vsel %vm387_vm4, %v382_v48, %v384_v5  ;;  %v483_v10 = vld [vmem:[#allocation2 + $0x68] sm:$0xff] }
  0xe0   : > { %396 = vst [vmem:[#allocation2 + $0x40] sm:$0xf0] %v388_v6  ;;  %398 = vst [vmem:[#allocation2 + $0x50] sm:$0xf0] %v390_v7  ;;  %v1146_v11 = vpack.c.bf16 %v483_v10, %v479_v9 }
  0xe2   : > { %v386_v12 = vpop.permute.xlu0 %385  ;;  %v401_v13 = vpop.permute.xlu1 %400  ;;  %1147 = vmatprep.subr.bf16.mxu0 %v1146_v11 }
  0xe3   : > { %v391_v14 = vsel %vm387_vm4, %v384_v5, %v386_v12  ;;  %v411_v15 = vsel %vm410_vm5, %v401_v13, %v403_v49  ;;  %v661_v49 = vlaneseq }
  0xe4   : > { %399 = vst [vmem:[#allocation2 + $0x58] sm:$0xf0] %v391_v14  ;;  %419 = vst [vmem:[#allocation2 + $0x60] sm:$0xf] %v411_v15 }
  0xe5   : > { %v662_v50 = vshrl.u32 %v661_v49, 7 }
  0xe6   : > { %v407_v16 = vpop.permute.xlu0 %406  ;;  %v409_v17 = vpop.permute.xlu1 %408 }
  0xe7   : > { %v413_v18 = vsel %vm410_vm5, %v405_v57, %v407_v16  ;;  %v414_v19 = vsel %vm410_vm5, %v407_v16, %v409_v17  ;;  %v478_v31 = vld [vmem:[#allocation2 + $0x40] sm:$0xff]  ;;  %v480_v42 = vld [vmem:[#allocation2 + $0x50] sm:$0xff]  ;;  %v663_v51 = vsub.s32 0, %v662_v50  ;;  %v667_v54 = vsub.s32 1, %v662_v50 }
  0xe8   : > { %421 = vst [vmem:[#allocation2 + $0x70] sm:$0xf] %v413_v18  ;;  %422 = vst [vmem:[#allocation2 + $0x78] sm:$0xf] %v414_v19  ;;  %v671_v59 = vsub.s32 2, %v662_v50  ;;  %v675_v10 = vsub.s32 3, %v662_v50 }
  0xe9   : > { %v664_v57 = vrot.slane %v659_v53, %v663_v51  ;;  %v668_v61 = vrot.slane %v659_v53, %v667_v54  ;;  %v1350_v18 = vmov 0.0|0.0   ;;  %v848_v19 = vld [vmem:[%s1721_s4] sm:$0xf] }
  0xea   : > { %v424_v20 = vpop.permute.xlu0 %423  ;;  %v430_v21 = vpop.permute.xlu1 %429  ;;  %v672_v3 = vrot.slane %v659_v53, %v671_v59  ;;  %v676_v12 = vrot.slane %v659_v53, %v675_v10 }
  0xeb   : > { %v434_v22 = vsel %vm433_vm6, %v424_v20, %v426_v58  ;;  %v436_v23 = vsel %vm433_vm6, %v428_v60, %v430_v21  ;;  %v481_v39 = vld [vmem:[#allocation2 + $0x58] sm:$0xff] }
  0xec   : > { %442 = vst [vmem:[#allocation2 + $0x60] sm:$0xf0] %v434_v22  ;;  %444 = vst [vmem:[#allocation2 + $0x70] sm:$0xf0] %v436_v23 }
  0xee   : > { %v432_v24 = vpop.permute.xlu0 %431  ;;  %v449_v25 = vpop.permute.xlu1 %448 }
  0xef   : > { %v437_v26 = vsel %vm433_vm6, %v430_v21, %v432_v24 }
  0xf0   : > { %445 = vst [vmem:[#allocation2 + $0x78] sm:$0xf0] %v437_v26 }
  0xf2   : > { %v451_v27 = vpop.permute.xlu0 %450  ;;  %v447_v28 = vpop.permute.xlu1 %446 }
  0xf3   : > { %v1569_v29 = vsel %vm456_vm7, %v449_v25, %v451_v27  ;;  %v1572_v30 = vsel %vm456_vm7, %v447_v28, %v449_v25  ;;  %v482_v32 = vld [vmem:[#allocation2 + $0x60] sm:$0xff]  ;;  %v484_v36 = vld [vmem:[#allocation2 + $0x70] sm:$0xff] }
  0xf4   : > { %466 = vst [vmem:[#allocation2 + $0x88] sm:$0xf] %v1569_v29  ;;  %465 = vst [vmem:[#allocation2 + $0x80] sm:$0xf] %v1572_v30  ;;  %v1148_v33 = vpack.c.bf16 %v482_v32, %v478_v31  ;;  %v1156_v43 = vpack.c.bf16 %v484_v36, %v480_v42 }
  0xf6   : > { %v453_v34 = vpop.permute.xlu0 %452  ;;  %v455_v35 = vpop.permute.xlu1 %454  ;;  %1149 = vmatpush1.bf16.msra.mxu0 %v1148_v33 }
  0xf7   : > { %v1577_v37 = vsel %vm456_vm7, %v451_v27, %v453_v34  ;;  %v460_v38 = vsel %vm456_vm7, %v453_v34, %v455_v35  ;;  %v485_v40 = vld [vmem:[#allocation2 + $0x78] sm:$0xff] }
  0xf8   : > { %467 = vst [vmem:[#allocation2 + $0x90] sm:$0xf] %v1577_v37  ;;  %468 = vst [vmem:[#allocation2 + $0x98] sm:$0xf] %v460_v38  ;;  %v1154_v41 = vpack.c.bf16 %v485_v40, %v481_v39 }
  0xfa   : > { %1155 = vmatprep.subr.bf16.mxu1 %v1154_v41 }
  0xfb   : > { %1157 = vmatpush1.bf16.msra.mxu1 %v1156_v43  ;;  %v487_v45 = vld [vmem:[#allocation2 + $0x88] sm:$0xf]  ;;  %v486_v46 = vld [vmem:[#allocation2 + $0x80] sm:$0xf] }
  0xfc   : > { %1109 = vmatprep.subr.msk.mxu0 %vm500_vm8, %v487_v45 }
  0xfd   : > { %1110 = vmatpush1.msk.msra.mxu0 %vm500_vm8, %v486_v46 }
  0xfe   : > { %1111 = vmatmul.mubr.msk.f32.vlgmr.msra.gmra.mrb[0].mxu0 %vm496_vm9, %v469_v44 }
  0xff   : > { %v489_v47 = vld [vmem:[#allocation2 + $0x98] sm:$0xf]  ;;  %v488_v48 = vld [vmem:[#allocation2 + $0x90] sm:$0xf]  ;;  %930 = vmatprep.mubr.f32.mxu0 %v1348_v8 }
 0x100   : > { %1112 = vmatprep.subr.msk.mxu1 %vm500_vm8, %v489_v47 }
 0x101   : > { %1113 = vmatpush1.msk.msra.mxu1 %vm500_vm8, %v488_v48 }
 0x102   : > { %1114 = vmatmul.mubr.msk.f32.vlgmr.msra.gmra.mrb[0].mxu1 %vm496_vm9, %v469_v44  ;;  %1166 = vmatprep.subr.bf16.mxu1 %v1350_v18 }
 0x103   : > { %1139 = vmatprep.mubr.msk.f32.mxu1 %vm1351_vm10, %v1348_v8 }
 0x107   : > { %v494_v52 = vpop.permute.xlu0 %493 }
 0x1d1   : > { %v579_v55 = vpop.f32.mrb[0].mxu0 }
 0x1d2   : > { %v580_v56 = vadd.f32 %v579_v55, %v494_v52  ;;  %v581_v58 = vpop.f32.mrb[1].mxu0 }
 0x1d3   : > { %v582_v60 = vadd.f32 %v581_v58, %v494_v52 }
 0x1d4   : > { %v655_v62 = vmax.f32 %v580_v56, 0.0 }
 0x1d5   : > { %v656_v63 = vmax.f32 %v582_v60, 0.0  ;;  %v650_v0 = vpop.f32.mrb[0].mxu1 }
 0x1d6   : > { %v681_v1 = vmul.f32 %v664_v57, %v655_v62  ;;  %v651_v2 = vadd.f32 %v650_v0, %v494_v52  ;;  %v652_v4 = vpop.f32.mrb[1].mxu1 }
 0x1d7   : > { %v682_v5 = vmul.f32 %v668_v61, %v656_v63  ;;  %v653_v9 = vadd.f32 %v652_v4, %v494_v52 }
 0x1d8   : > { %685 = vst [vmem:[#allocation3] sm:$0xf] %v681_v1  ;;  %v657_v6 = vmax.f32 %v651_v2, 0.0  ;;  %747 = vrot.lane.b32.xlu0 %v681_v1, %s1343_s7  ;;  %v692_v15 = vrot.slane %v681_v1, 4 }
 0x1d9   : > { %686 = vst [vmem:[#allocation3 + $0x8] sm:$0xf] %v682_v5  ;;  %v658_v11 = vmax.f32 %v653_v9, 0.0  ;;  %v693_v16 = vrot.slane %v682_v5, 4 }
 0x1da   : > { %v683_v7 = vmul.f32 %v672_v3, %v657_v6 }
 0x1db   : > { %v684_v13 = vmul.f32 %v676_v12, %v658_v11 }
 0x1dc   : > { %687 = vst [vmem:[#allocation3 + $0x10] sm:$0xf] %v683_v7  ;;  %717 = vrot.lane.b32.xlu1 %v683_v7, %s1340_s15  ;;  %781 = vrot.lane.b32.xlu0 %v681_v1, %s1345_s11  ;;  %v694_v14 = vrot.slane %v683_v7, 4 }
 0x1dd   : > { %v695_v17 = vrot.slane %v684_v13, 4 }
 0x1e0   : > { %715 = vrot.lane.b32.xlu0 %v682_v5, %s1340_s15  ;;  %713 = vrot.lane.b32.xlu1 %v681_v1, %s1340_s15 }
 0x1e4   : > { %719 = vrot.lane.b32.xlu0 %v684_v13, %s1340_s15  ;;  %751 = vrot.lane.b32.xlu1 %v683_v7, %s1343_s7  ;;  %s1277_s15 = scalar_lea.vmem %s1276_s29, 384 }
 0x1e8   : > { %749 = vrot.lane.b32.xlu0 %v682_v5, %s1343_s7  ;;  %785 = vrot.lane.b32.xlu1 %v683_v7, %s1345_s11 }
 0x1ec   : > { %783 = vrot.lane.b32.xlu0 %v682_v5, %s1345_s11  ;;  %700 = vrot.lane.b32.xlu1 %v694_v14, %s1341_s16 }
 0x1f0   : > { %753 = vrot.lane.b32.xlu0 %v684_v13, %s1343_s7  ;;  %734 = vrot.lane.b32.xlu1 %v694_v14, %s1342_s18 }
 0x1f4   : > { %787 = vrot.lane.b32.xlu0 %v684_v13, %s1345_s11  ;;  %768 = vrot.lane.b32.xlu1 %v694_v14, %s1344_s19  ;;  %s1176_s11 = smul.u32 192, %s1409_s25  ;;  %s1020_s25 = scalar_lea.sflag [#allocation6], %s1487_s20 }
 0x1f6   : > { %s1673_s17 = scalar_lea.hbm %s1723_s6, %s1176_s11 }
 0x1f8   : > { %802 = vrot.lane.b32.xlu1 %v694_v14, %s1346_s13  ;;  %696 = vrot.lane.b32.xlu0 %v692_v15, %s1341_s16 }
 0x1fc   : > { %764 = vrot.lane.b32.xlu1 %v692_v15, %s1344_s19  ;;  %730 = vrot.lane.b32.xlu0 %v692_v15, %s1342_s18 }
 0x200   : > { %798 = vrot.lane.b32.xlu1 %v692_v15, %s1346_s13  ;;  %732 = vrot.lane.b32.xlu0 %v693_v16, %s1342_s18 }
 0x204   : > { %698 = vrot.lane.b32.xlu1 %v693_v16, %s1341_s16  ;;  %766 = vrot.lane.b32.xlu0 %v693_v16, %s1344_s19 }
 0x208   : > { %702 = vrot.lane.b32.xlu1 %v695_v17, %s1341_s16  ;;  %800 = vrot.lane.b32.xlu0 %v693_v16, %s1346_s13 }
 0x20c   : > { %736 = vrot.lane.b32.xlu1 %v695_v17, %s1342_s18  ;;  %817 = vrot.lane.b32.xlu0 %v682_v5, %s1347_s10 }
 0x210   : > { %770 = vrot.lane.b32.xlu1 %v695_v17, %s1344_s19  ;;  %815 = vrot.lane.b32.xlu0 %v681_v1, %s1347_s10  ;;  %s1175_s19 = smul.u32 12, %s1487_s20 }
 0x214   : > { %804 = vrot.lane.b32.xlu1 %v695_v17, %s1346_s13  ;;  %851 = vperm.xlu0 %1235, %v848_v19   ;;  %s267_s13 = scalar_lea.vmem [#allocation7], %s1175_s19 }
 0x218   : > { %819 = vrot.lane.b32.xlu1 %v683_v7, %s1347_s10 }
 0x21c   : > { %821 = vrot.lane.b32.xlu1 %v684_v13, %s1347_s10  ;;  %s1034_s10 = sshll.u32 %s267_s13, 4  ;;  %s1675_s10 = int_to_ptr.vmem [resolvable:$true] %s1034_s10 }
 0x21d   : > { %s1271_s26 = scalar_lea.vmem %s1675_s10, 192  ;;  %p1278_p5 = scmp.lt.s32.totalorder %s1675_s10, %s1276_s29 }
 0x21e   : > { %p1272_p6 = scmp.ne.s32.totalorder %s1675_s10, %s1271_s26  ;;  %p1279_p10 = scmp.lt.s32.totalorder %s1277_s15, %s1271_s26 }
 0x220   : > { %p1273_p12 = pnand %p1272_p6, %p1731_p11  ;;  %p1280_p2 = por %p1279_p10, %p1278_p5 }
 0x222   : > { %p1274_p13 = pneg %p1273_p12 }
 0x224   : > { %p1281_p4 = pnand %p1280_p2, %p1274_p13 }
 0x24a   : > { %v748_v20 = vpop.permute.xlu0 %747 }
 0x24e   : > { %v718_v21 = vpop.permute.xlu1 %717  ;;  %v782_v22 = vpop.permute.xlu0 %781 }
 0x252   : > { %v716_v23 = vpop.permute.xlu0 %715  ;;  %v714_v24 = vpop.permute.xlu1 %713 }
 0x253   : > { %v722_v25 = vsel %vm318_vm0, %v716_v23, %v718_v21  ;;  %v721_v26 = vsel %vm318_vm0, %v714_v24, %v716_v23 }
 0x254   : > { %728 = vst [vmem:[#allocation3 + $0x20] sm:$0xf] %v722_v25  ;;  %727 = vst [vmem:[#allocation3 + $0x18] sm:$0xf] %v721_v26 }
 0x256   : > { %v720_v27 = vpop.permute.xlu0 %719  ;;  %v752_v28 = vpop.permute.xlu1 %751 }
 0x257   : > { %v723_v31 = vsel %vm318_vm0, %v718_v21, %v720_v27 }
 0x258   : > { %729 = vst [vmem:[#allocation3 + $0x28] sm:$0xf] %v723_v31 }
 0x25a   : > { %v750_v32 = vpop.permute.xlu0 %749  ;;  %v786_v33 = vpop.permute.xlu1 %785 }
 0x25b   : > { %v755_v34 = vsel %vm364_vm3, %v748_v20, %v750_v32  ;;  %v756_v35 = vsel %vm364_vm3, %v750_v32, %v752_v28 }
 0x25c   : > { %761 = vst [vmem:[#allocation3 + $0x30] sm:$0xf] %v755_v34  ;;  %762 = vst [vmem:[#allocation3 + $0x38] sm:$0xf] %v756_v35 }
 0x25e   : > { %v784_v36 = vpop.permute.xlu0 %783  ;;  %v701_v38 = vpop.permute.xlu1 %700 }
 0x25f   : > { %v789_v39 = vsel %vm410_vm5, %v782_v22, %v784_v36  ;;  %v790_v40 = vsel %vm410_vm5, %v784_v36, %v786_v33 }
 0x260   : > { %795 = vst [vmem:[#allocation3 + $0x48] sm:$0xf] %v789_v39  ;;  %796 = vst [vmem:[#allocation3 + $0x50] sm:$0xf] %v790_v40  ;;  %v832_v39 = vld [vmem:[%s1719_s2] sm:$0xf] }
 0x262   : > { %v754_v41 = vpop.permute.xlu0 %753  ;;  %v735_v42 = vpop.permute.xlu1 %734 }
 0x263   : > { %v757_v43 = vsel %vm364_vm3, %v752_v28, %v754_v41 }
 0x264   : > { %763 = vst [vmem:[#allocation3 + $0x40] sm:$0xf] %v757_v43 }
 0x266   : > { %v788_v44 = vpop.permute.xlu0 %787  ;;  %v769_v45 = vpop.permute.xlu1 %768 }
 0x267   : > { %v791_v46 = vsel %vm410_vm5, %v786_v33, %v788_v44 }
 0x268   : > { %797 = vst [vmem:[#allocation3 + $0x58] sm:$0xf] %v791_v46 }
 0x26a   : > { %v803_v47 = vpop.permute.xlu1 %802  ;;  %v697_v48 = vpop.permute.xlu0 %696 }
 0x26e   : > { %v765_v49 = vpop.permute.xlu1 %764  ;;  %v731_v50 = vpop.permute.xlu0 %730 }
 0x272   : > { %v799_v51 = vpop.permute.xlu1 %798  ;;  %v733_v52 = vpop.permute.xlu0 %732 }
 0x273   : > { %v738_v53 = vsel %vm341_vm2, %v731_v50, %v733_v52  ;;  %v739_v54 = vsel %vm341_vm2, %v733_v52, %v735_v42 }
 0x274   : > { %744 = vst [vmem:[#allocation3 + $0x18] sm:$0xf0] %v738_v53  ;;  %745 = vst [vmem:[#allocation3 + $0x20] sm:$0xf0] %v739_v54 }
 0x276   : > { %v699_v55 = vpop.permute.xlu1 %698  ;;  %v767_v56 = vpop.permute.xlu0 %766 }
 0x277   : > { %v704_v57 = vsel %vm295_vm1, %v697_v48, %v699_v55  ;;  %v705_v58 = vsel %vm295_vm1, %v699_v55, %v701_v38  ;;  %v772_v59 = vsel %vm387_vm4, %v765_v49, %v767_v56  ;;  %v773_v60 = vsel %vm387_vm4, %v767_v56, %v769_v45 }
 0x278   : > { %710 = vst [vmem:[#allocation3] sm:$0xf0] %v704_v57  ;;  %711 = vst [vmem:[#allocation3 + $0x8] sm:$0xf0] %v705_v58 }
 0x279   : > { %778 = vst [vmem:[#allocation3 + $0x30] sm:$0xf0] %v772_v59  ;;  %779 = vst [vmem:[#allocation3 + $0x38] sm:$0xf0] %v773_v60 }
 0x27a   : > { %v703_v61 = vpop.permute.xlu1 %702  ;;  %v801_v62 = vpop.permute.xlu0 %800 }
 0x27b   : > { %v706_v63 = vsel %vm295_vm1, %v701_v38, %v703_v61  ;;  %v806_v0 = vsel %vm433_vm6, %v799_v51, %v801_v62  ;;  %v807_v1 = vsel %vm433_vm6, %v801_v62, %v803_v47  ;;  %v837_v4 = vld [vmem:[#allocation3 + $0x20] sm:$0xff]  ;;  %v836_v9 = vld [vmem:[#allocation3 + $0x18] sm:$0xff] }
 0x27c   : > { %712 = vst [vmem:[#allocation3 + $0x10] sm:$0xf0] %v706_v63  ;;  %812 = vst [vmem:[#allocation3 + $0x48] sm:$0xf0] %v806_v0 }
 0x27d   : > { %813 = vst [vmem:[#allocation3 + $0x50] sm:$0xf0] %v807_v1 }
 0x27e   : > { %v737_v2 = vpop.permute.xlu1 %736  ;;  %v818_v3 = vpop.permute.xlu0 %817 }
 0x27f   : > { %v740_v5 = vsel %vm341_vm2, %v735_v42, %v737_v2  ;;  %v834_v6 = vld [vmem:[#allocation3 + $0x8] sm:$0xff]  ;;  %v833_v7 = vld [vmem:[#allocation3] sm:$0xff] }
 0x280   : > { %746 = vst [vmem:[#allocation3 + $0x28] sm:$0xf0] %v740_v5  ;;  %v1158_v10 = vpack.c.bf16 %v837_v4, %v834_v6  ;;  %v1160_v11 = vpack.c.bf16 %v836_v9, %v833_v7  ;;  %v840_v14 = vld [vmem:[#allocation3 + $0x38] sm:$0xff]  ;;  %v839_v19 = vld [vmem:[#allocation3 + $0x30] sm:$0xff] }
 0x282   : > { %v771_v12 = vpop.permute.xlu1 %770  ;;  %1159 = vmatprep.subr.bf16.mxu0 %v1158_v10  ;;  %v816_v13 = vpop.permute.xlu0 %815 }
 0x283   : > { %v774_v15 = vsel %vm387_vm4, %v769_v45, %v771_v12  ;;  %v823_v16 = vsel %vm456_vm7, %v816_v13, %v818_v3  ;;  %1161 = vmatpush1.bf16.msra.mxu0 %v1160_v11  ;;  %v842_v20 = vld [vmem:[#allocation3 + $0x48] sm:$0xff]  ;;  %v835_v25 = vld [vmem:[#allocation3 + $0x10] sm:$0xff] }
 0x284   : > { %v843_v17 = vld [vmem:[#allocation3 + $0x50] sm:$0xff]  ;;  %780 = vst [vmem:[#allocation3 + $0x40] sm:$0xf0] %v774_v15  ;;  %829 = vst [vmem:[#allocation3 + $0x60] sm:$0xf] %v823_v16  ;;  %v1164_v22 = vpack.c.bf16 %v842_v20, %v839_v19 }
 0x285   : > { %v1162_v21 = vpack.c.bf16 %v843_v17, %v840_v14 }
 0x286   : > { %v805_v23 = vpop.permute.xlu1 %804 }
 0x287   : > { %1163 = vmatprep.subr.bf16.mxu0 %v1162_v21  ;;  %v808_v24 = vsel %vm433_vm6, %v803_v47, %v805_v23  ;;  %v838_v26 = vld [vmem:[#allocation3 + $0x28] sm:$0xff] }
 0x288   : > { %1165 = vmatpush1.bf16.msra.mxu0 %v1164_v22  ;;  %814 = vst [vmem:[#allocation3 + $0x58] sm:$0xf0] %v808_v24  ;;  %v1167_v27 = vpack.c.bf16 %v838_v26, %v835_v25 }
 0x28a   : > { %1168 = vmatpush3.bf16.msra.mxu1 %v1167_v27  ;;  %v820_v28 = vpop.permute.xlu1 %819 }
 0x28b   : > { %v824_v31 = vsel %vm456_vm7, %v818_v3, %v820_v28  ;;  %1169 = vmatprep.subr.bf16.mxu1 %v1350_v18  ;;  %v841_v34 = vld [vmem:[#allocation3 + $0x40] sm:$0xff] }
 0x28c   : > { %830 = vst [vmem:[#allocation3 + $0x68] sm:$0xf] %v824_v31  ;;  %v845_v18 = vld [vmem:[#allocation3 + $0x60] sm:$0xf] }
 0x28e   : > { %v822_v32 = vpop.permute.xlu1 %821 }
 0x28f   : > { %v825_v33 = vsel %vm456_vm7, %v820_v28, %v822_v32  ;;  %v844_v35 = vld [vmem:[#allocation3 + $0x58] sm:$0xff] }
 0x290   : > { %831 = vst [vmem:[#allocation3 + $0x70] sm:$0xf] %v825_v33  ;;  %v1170_v36 = vpack.c.bf16 %v844_v35, %v841_v34 }
 0x292   : > { %1171 = vmatpush3.bf16.msra.mxu1 %v1170_v36 }
 0x293   : > { %v846_v38 = vld [vmem:[#allocation3 + $0x68] sm:$0xf]  ;;  %1137 = vmatprep.subr.mxu1 %v1348_v8  ;;  %v852_v41 = vpop.permute.xlu0 %851 }
 0x294   : > { %1115 = vmatprep.subr.msk.mxu0 %vm500_vm8, %v846_v38 }
 0x295   : > { %1116 = vmatpush1.msk.msra.mxu0 %vm500_vm8, %v845_v18 }
 0x296   : > { %1117 = vmatmul.mubr.msk.f32.vlgmr.msra.gmra.mrb[2].mxu0 %vm496_vm9, %v832_v39 }
 0x297   : > { %v847_v40 = vld [vmem:[#allocation3 + $0x70] sm:$0xf] }
 0x298   : > { %1138 = vmatpush3.msk.msra.mxu1 %vm500_vm8, %v847_v40 }
 0x299   : > { %1140 = vmatmul.mubr.msk.f32.vlgmr.msra.gmra.mrb[2].mxu1 %vm496_vm9, %v832_v39 }
 0x369   : > { %v932_v42 = vpop.f32.mrb[2].mxu0 }
 0x36a   : > { %v933_v43 = vadd.f32 %v932_v42, %v852_v41  ;;  %v934_v44 = vpop.f32.mrb[3].mxu0 }
 0x36b   : > { %v935_v45 = vadd.f32 %v934_v44, %v852_v41 }
 0x36c   : > { %v1007_v8 = vadd.f32 %v933_v43, %v1572_v30  ;;  %v1003_v46 = vpop.f32.mrb[2].mxu1 }
 0x36d   : > { %v1008_v47 = vadd.f32 %v935_v45, %v1569_v29  ;;  %v1004_v48 = vadd.f32 %v1003_v46, %v852_v41  ;;  %v1141_v49 = vpop.f32.mrb[3].mxu1 }
 0x36e   : > { %v1010_v50 = vmax.f32 %v1007_v8, 0.0 }
 0x36f   : > { %v1011_v51 = vmax.f32 %v1008_v47, 0.0  ;;  %v1009_v52 = vadd.f32 %v1004_v48, %v1577_v37 }
 0x371   : > { %v1015_v53 = vcombine.low %v1010_v50, %v1011_v51  ;;  %v1012_v54 = vmax.f32 %v1009_v52, 0.0 }
 0x373   : > { %1018 = vst [vmem:[%s267_s13 + $0x8] sm:$0xf] %v1012_v54  ;;  %1017 = vst [vmem:[%s267_s13] sm:$0xff] %v1015_v53 }
 0x374   : > { %1284 = shalt.err (!%p1281_p4)
}
 0x375   : > { %s1285_s20 = scalar_lea.hbm %s1673_s17, 192  ;;  %s1289_s18 = scalar_lea.hbm %s1723_s6, 384 }
 0x376   : > { %p1286_p7 = scmp.ne.s32.totalorder %s1673_s17, %s1285_s20  ;;  %p1290_p0 = scmp.lt.u32.totalorder %s1673_s17, %s1723_s6 }
 0x377   : > { %p1291_p1 = scmp.lt.u32.totalorder %s1289_s18, %s1285_s20  ;;  %p1293_p6 = scmp.lt.u32.totalorder %s1285_s20, %s1673_s17 }
 0x378   : > { %p1287_p8 = pnand %p1286_p7, %p1731_p11 }
 0x379   : > { %p1292_p3 = por %p1291_p1, %p1290_p0 }
 0x37a   : > { %p1288_p9 = pneg %p1287_p8 }
 0x37b   : > { %p1294_p12 = por %p1293_p6, %p1292_p3 }
 0x37d   : > { %p1295_p13 = pnand %p1294_p12, %p1288_p9 }
 0x37f   : > { %1298 = shalt.err (!%p1295_p13)
}
 0x380   : > { %1179 = dma.vmem_to_hbm [thread:$0]  (%p1731_p11), %s1675_s10, 192, %s1673_s17, %s1020_s25  }
 0x381 PF: > { %s1046_s13 = sand.u32 1, %s1325_s21   ;;  %p1732_p5 = scmp.ne.s32.totalorder %s1727_s9, 0 }
 0x382   : > { %p1733_p10 = scmp.ge.s32.totalorder %s1337_s24, 2  ;;  %s1047_s12 = scalar_lea.sflag [#allocation6], %s1046_s13 }
 0x384   : > { %p1186_p2 = pnand %p1733_p10, %p1732_p5 }
 0x386   : > { %1320 = dma.done.wait (!%p1186_p2), %s1047_s12, 192  }
 0x387   : > { %1322 = vsyncadd (!%p1186_p2), %s1047_s12, 4294967104  ;;  %p19_p4 = scmp.ge.s32.totalorder %s1413_s27, 4   ;;  %s1734_s21 = smov %s1329_s22 }
 0x388   : > { %s1735_s22 = smov %s1333_s23  ;;  %s1736_s23 = smov %s1425_s30 }
 0x389   : > { %s1737_s24 = smov %s1413_s27  ;;  %21 = sbr.rel (!%p19_p4) target bundleno = 5 (0x5), region = 89 }
 0x390   :  { %1052 = vsyncpa [#allocation5], 1 }
 0x391   :  { %1054 = vsyncpa [#allocation5 + $0x1], 1 }
 0x392   :  { %1055 = vsyncpa [#allocation6], 1 }
 0x393   :  { %1057 = vsyncpa [#allocation6 + $0x1], 1 }

</bundles_post_ra>
